<compile_context>
chip_gen: v7x
topology: tpu7x:2x2x1
jax: 0.10.0
libtpu: 0.0.40
codegen_flags: <defaults>
</compile_context>

<pallas_src>
import functools

import jax
import jax.numpy as jnp
from jax.experimental import pallas as pl
from jax.experimental.pallas import tpu as pltpu

K_IN = 784   # input features (28*28)
H = 64       # hidden width
N_OUT = 10   # logits


def _round_up(n, m):
    return ((n + m - 1) // m) * m


def mlp_kernel(x_ref, w1_ref, b1_ref, w2_ref, b2_ref, o_ref, *, mxu_dtype):
    # fc1 + ReLU: cast the streamed f32 x tile to bf16 right before the dot
    # (MXU operands), accumulate in f32.  The cast lands on the otherwise-idle
    # VPU and stays hidden under the x DMA of the next tile.
    x = x_ref[...].astype(mxu_dtype)
    h = jnp.dot(x, w1_ref[...], preferred_element_type=jnp.float32)
    h = jnp.maximum(h + b1_ref[...], 0.0)                  # (tb, 64) + (1, 64)
    # fc2: tiny weight-resident f32 matmul; store the (tb, 10) logits directly.
    out = jnp.dot(h, w2_ref[...], preferred_element_type=jnp.float32)
    o_ref[...] = (out + b2_ref[...]).astype(o_ref.dtype)


def net_forward(x, w1, b1, w2, b2, *, tile_b=4096, mxu_bf16=True):
    """x: [B, 1, 28, 28] or [B, 784] -> logits [B, 10] (float32).

    Weights stored [in, out]: w1 [784, 64], b1 [64]/[1, 64], w2 [64, 10],
    b2 [10]/[1, 10] (same math as PyTorch nn.Linear with transposed storage).
    """
    x2d = x.reshape(-1, K_IN)
    if x2d.dtype != jnp.float32:
        x2d = x2d.astype(jnp.float32)
    B = x2d.shape[0]

    # --- Generation-aware tile sizing ----------------------------------------
    # Per-row VMEM footprint: double-buffered f32 x block + in-kernel bf16 copy
    # + f32 hidden + double-buffered logits block (weights add only ~0.2 MiB).
    row_bytes = 2 * K_IN * 4 + K_IN * 2 + H * 4 + 2 * N_OUT * 4   # ~8.2 KiB/row
    try:
        vmem_cap = int(getattr(pltpu.get_tpu_info(), "vmem_capacity_bytes",
                               64 * 1024 * 1024))
    except Exception:
        vmem_cap = 64 * 1024 * 1024                               # v7x floor
    tb_cap = max(8, ((vmem_cap // 2) // row_bytes) // 8 * 8)
    tile_b = max(8, min(int(tile_b), tb_cap))

    # Balanced tiling over a cdiv grid (no batch-padding pass).  Force >= 2
    # tiles for non-trivial batches so the "parallel" batch axis can be sharded
    # across v7x's two TensorCores; near-free on single-TC chips.
    n_tiles = int(pl.cdiv(B, tile_b))
    if n_tiles == 1 and B >= 256:
        n_tiles = 2
    tb = max(8, _round_up(int(pl.cdiv(B, n_tiles)), 8))
    grid = (int(pl.cdiv(B, tb)),)

    # --- Kernel operands ------------------------------------------------------
    mxu_dtype = jnp.bfloat16 if mxu_bf16 else jnp.float32
    w1_k = jnp.asarray(w1).reshape(K_IN, H).astype(mxu_dtype)   # tiny, resident
    b1_k = jnp.asarray(b1, jnp.float32).reshape(1, H)
    w2_k = jnp.asarray(w2, jnp.float32).reshape(H, N_OUT)
    b2_k = jnp.asarray(b2, jnp.float32).reshape(1, N_OUT)

    vmem_limit = int(min(max(32 * 1024 * 1024, tb * row_bytes + (8 << 20)),
                         (vmem_cap * 9) // 10))

    # TODO(synk): if the producer can store x (and w1) already-quantized in HBM
    # (fp8 on v7x, int8+scale on v5e/v6e, or bf16), stream that dtype directly
    # instead of f32 for another ~2x on this mem-bound kernel.
    kernel = functools.partial(mlp_kernel, mxu_dtype=mxu_dtype)
    out = pl.pallas_call(
        kernel,
        out_shape=jax.ShapeDtypeStruct((B, N_OUT), jnp.float32),
        grid_spec=pl.GridSpec(
            grid=grid,
            in_specs=[
                pl.BlockSpec((tb, K_IN), lambda i: (i, 0)),     # x: streamed f32
                pl.BlockSpec((K_IN, H), lambda i: (0, 0)),      # w1 (VMEM-resident)
                pl.BlockSpec((1, H), lambda i: (0, 0)),         # b1
                pl.BlockSpec((H, N_OUT), lambda i: (0, 0)),     # w2
                pl.BlockSpec((1, N_OUT), lambda i: (0, 0)),     # b2
            ],
            out_specs=pl.BlockSpec((tb, N_OUT), lambda i: (i, 0)),
        ),
        compiler_params=pltpu.CompilerParams(
            dimension_semantics=("parallel",),
            vmem_limit_bytes=vmem_limit,
        ),
    )(x2d, w1_k, b1_k, w2_k, b2_k)
    return out


def init_params(key):
    k1, k2, k3, k4 = jax.random.split(key, 4)
    # Deterministic synthetic init (uniform, roughly PyTorch-Linear-like scale).
    w1 = jax.random.uniform(k1, (K_IN, H), jnp.float32, -1.0, 1.0) / jnp.sqrt(784.0)
    b1 = jax.random.uniform(k2, (1, H), jnp.float32, -1.0, 1.0) / jnp.sqrt(784.0)
    w2 = jax.random.uniform(k3, (H, N_OUT), jnp.float32, -1.0, 1.0) / jnp.sqrt(64.0)
    b2 = jax.random.uniform(k4, (1, N_OUT), jnp.float32, -1.0, 1.0) / jnp.sqrt(64.0)
    return w1, b1, w2, b2


if __name__ == "__main__":
    key = jax.random.PRNGKey(0)
    kx, kp = jax.random.split(key)
    B = 8
    x = jax.random.normal(kx, (B, 1, 28, 28), jnp.float32)
    w1, b1, w2, b2 = init_params(kp)

    out = jax.block_until_ready(net_forward(x, w1, b1, w2, b2))
    assert out.shape == (B, N_OUT)

    # Primary check: reference with the same bf16 fc1 numerics as the kernel.
    x2d = x.reshape(-1, K_IN)
    h_ref = jnp.dot(x2d.astype(jnp.bfloat16), w1.astype(jnp.bfloat16),
                    preferred_element_type=jnp.float32) + b1
    ref_bf16 = jnp.maximum(h_ref, 0.0) @ w2 + b2
    assert jnp.allclose(out, ref_bf16, atol=1e-3, rtol=1e-3)

    # Loose sanity check against the pure-f32 PyTorch-equivalent forward.
    ref_f32 = jnp.maximum(x2d @ w1 + b1, 0.0) @ w2 + b2
    assert jnp.allclose(out, ref_f32, atol=5e-2, rtol=5e-2)

    print("KERNEL_OK")
</pallas_src>

<mosaic_0001>
module attributes {stable_mosaic.version = 11 : i64} {
  func.func @mlp_kernel(%arg0: i32, %arg1: memref<8x784xf32, #tpu.memory_space<vmem>>, %arg2: memref<784x64xbf16, #tpu.memory_space<vmem>>, %arg3: memref<1x64xf32, #tpu.memory_space<vmem>>, %arg4: memref<64x10xf32, #tpu.memory_space<vmem>>, %arg5: memref<1x10xf32, #tpu.memory_space<vmem>>, %arg6: memref<8x10xf32, #tpu.memory_space<vmem>>) attributes {dimension_semantics = [#tpu.dimension_semantics<parallel>], iteration_bounds = array<i64: 1>, scalar_prefetch = 0 : i64, scratch_operands = 0 : i64, tpu.core_type = #tpu.core_type<tc>, window_params = [{transform_indices = @transform_0, window_bounds = array<i64: 8, 784>}, {pipeline_mode = #tpu.pipeline_mode<synchronous>, transform_indices = @transform_1, window_bounds = array<i64: 784, 64>}, {pipeline_mode = #tpu.pipeline_mode<synchronous>, transform_indices = @transform_2, window_bounds = array<i64: 1, 64>}, {pipeline_mode = #tpu.pipeline_mode<synchronous>, transform_indices = @transform_3, window_bounds = array<i64: 64, 10>}, {pipeline_mode = #tpu.pipeline_mode<synchronous>, transform_indices = @transform_4, window_bounds = array<i64: 1, 10>}, {transform_indices = @transform_5, window_bounds = array<i64: 8, 10>}]} {
    %c0 = arith.constant 0 : index
    %c0_0 = arith.constant 0 : index
    %0 = vector.load %arg1[%c0, %c0_0] : memref<8x784xf32, #tpu.memory_space<vmem>>, vector<8x784xf32>
    %1 = arith.truncf %0 : vector<8x784xf32> to vector<8x784xbf16>
    %c0_1 = arith.constant 0 : index
    %c0_2 = arith.constant 0 : index
    %2 = vector.load %arg2[%c0_1, %c0_2] : memref<784x64xbf16, #tpu.memory_space<vmem>>, vector<784x64xbf16>
    %cst = arith.constant dense<0.000000e+00> : vector<8x64xf32>
    %3 = tpu.matmul %1, %2, %cst {dimension_numbers = #tpu.dot_dimension_numbers<[1], [0], [0], [1], [0, 0, 1, 1], [], []>} : vector<8x784xbf16>, vector<784x64xbf16>, vector<8x64xf32> -> vector<8x64xf32>
    %c0_3 = arith.constant 0 : index
    %c0_4 = arith.constant 0 : index
    %4 = vector.load %arg3[%c0_3, %c0_4] : memref<1x64xf32, #tpu.memory_space<vmem>>, vector<1x64xf32>
    %5 = vector.broadcast %4 : vector<1x64xf32> to vector<8x64xf32>
    %6 = arith.addf %3, %5 : vector<8x64xf32>
    %cst_5 = arith.constant 0.000000e+00 : f32
    %7 = vector.broadcast %cst_5 : f32 to vector<8x64xf32>
    %8 = arith.maximumf %6, %7 : vector<8x64xf32>
    %c0_6 = arith.constant 0 : index
    %c0_7 = arith.constant 0 : index
    %9 = vector.load %arg4[%c0_6, %c0_7] : memref<64x10xf32, #tpu.memory_space<vmem>>, vector<64x10xf32>
    %cst_8 = arith.constant dense<0.000000e+00> : vector<8x10xf32>
    %10 = tpu.matmul %8, %9, %cst_8 {dimension_numbers = #tpu.dot_dimension_numbers<[1], [0], [0], [1], [0, 0, 1, 1], [], []>} : vector<8x64xf32>, vector<64x10xf32>, vector<8x10xf32> -> vector<8x10xf32>
    %c0_9 = arith.constant 0 : index
    %c0_10 = arith.constant 0 : index
    %11 = vector.load %arg5[%c0_9, %c0_10] : memref<1x10xf32, #tpu.memory_space<vmem>>, vector<1x10xf32>
    %12 = vector.broadcast %11 : vector<1x10xf32> to vector<8x10xf32>
    %13 = arith.addf %10, %12 : vector<8x10xf32>
    %c0_11 = arith.constant 0 : index
    %c0_12 = arith.constant 0 : index
    %14 = vector.load %arg6[%c0_11, %c0_12] : memref<8x10xf32, #tpu.memory_space<vmem>>, vector<8x10xf32>
    tpu.vector_store %arg6[%c0_11, %c0_12], %13 {strides = array<i32>} : memref<8x10xf32, #tpu.memory_space<vmem>>, vector<8x10xf32>,
    return
  }
  func.func @transform_0(%arg0: i32) -> (i32, i32) {
    %c0_i32 = arith.constant 0 : i32
    %c0_i32_0 = arith.constant 0 : i32
    return %arg0, %c0_i32 : i32, i32
  }
  func.func @transform_1(%arg0: i32) -> (i32, i32) {
    %c0_i32 = arith.constant 0 : i32
    %c0_i32_0 = arith.constant 0 : i32
    %c0_i32_1 = arith.constant 0 : i32
    return %c0_i32, %c0_i32_0 : i32, i32
  }
  func.func @transform_2(%arg0: i32) -> (i32, i32) {
    %c0_i32 = arith.constant 0 : i32
    %c0_i32_0 = arith.constant 0 : i32
    %c0_i32_1 = arith.constant 0 : i32
    return %c0_i32, %c0_i32_0 : i32, i32
  }
  func.func @transform_3(%arg0: i32) -> (i32, i32) {
    %c0_i32 = arith.constant 0 : i32
    %c0_i32_0 = arith.constant 0 : i32
    %c0_i32_1 = arith.constant 0 : i32
    return %c0_i32, %c0_i32_0 : i32, i32
  }
  func.func @transform_4(%arg0: i32) -> (i32, i32) {
    %c0_i32 = arith.constant 0 : i32
    %c0_i32_0 = arith.constant 0 : i32
    %c0_i32_1 = arith.constant 0 : i32
    return %c0_i32, %c0_i32_0 : i32, i32
  }
  func.func @transform_5(%arg0: i32) -> (i32, i32) {
    %c0_i32 = arith.constant 0 : i32
    %c0_i32_0 = arith.constant 0 : i32
    return %arg0, %c0_i32 : i32, i32
  }
}

</mosaic_0001>

<bundles_post_ra>
// kernel: tpu_custom_call.1
= control target key start
LH: loop header
LB: loop body
LE: loop exit
PB: predicated region body
PF: predicated region fallthrough
CT: control target
= control target key end

     0   :  { %v949_v44 = vmov 0.0   ;;  %vm950_vm0 = vmmov 0   ;;  %s1195_s0 = inlined_call_operand.vmem [shape: f32[8,784], index: 0, kind: input, shape index: {}]   ;;  %s1196_s1 = inlined_call_operand.vmem [shape: bf16[784,64], index: 1, kind: input, shape index: {}]   ;;  %s1197_s2 = inlined_call_operand.vmem [shape: f32[1,64], index: 2, kind: input, shape index: {}]   ;;  %s1198_s3 = inlined_call_operand.vmem [shape: f32[64,10], index: 3, kind: input, shape index: {}]   ;;  %s1199_s4 = inlined_call_operand.vmem [shape: f32[1,10], index: 4, kind: input, shape index: {}]   ;;  %s1200_s5 = inlined_call_operand.hbm [shape: f32[8,10], index: 5, kind: output, shape index: {}]  }
   0x1   :  { %v876_v0 = vld [vmem:[%s1196_s1 + $0x40] sm:$0xff]   ;;  %v880_v4 = vld [vmem:[%s1196_s1 + $0x48] sm:$0xff]   ;;  %v884_v8 = vld [vmem:[%s1196_s1 + $0x50] sm:$0xff]  }
   0x2   :  { %v877_v1 = vld [vmem:[%s1196_s1] sm:$0xff]   ;;  %758 = vmatprep.subr.bf16.mxu0 %v876_v0  ;;  %v881_v5 = vld [vmem:[%s1196_s1 + $0x8] sm:$0xff]   ;;  %v885_v9 = vld [vmem:[%s1196_s1 + $0x10] sm:$0xff]  }
   0x3   :  { %v878_v2 = vld [vmem:[%s1196_s1 + $0xc0] sm:$0xff]   ;;  %759 = vmatpush3.bf16.msra.mxu0 %v877_v1  ;;  %v882_v6 = vld [vmem:[%s1196_s1 + $0xc8] sm:$0xff]   ;;  %v886_v10 = vld [vmem:[%s1196_s1 + $0xd0] sm:$0xff]  }
   0x4   :  { %v879_v3 = vld [vmem:[%s1196_s1 + $0x80] sm:$0xff]   ;;  %780 = vmatprep.subr.bf16.mxu1 %v878_v2  ;;  %760 = vmatprep.subr.bf16.mxu0 %v880_v4  ;;  %v883_v7 = vld [vmem:[%s1196_s1 + $0x88] sm:$0xff]   ;;  %v887_v11 = vld [vmem:[%s1196_s1 + $0x90] sm:$0xff]  }
   0x5   :  { %781 = vmatpush3.bf16.msra.mxu1 %v879_v3  ;;  %v888_v12 = vld [vmem:[%s1196_s1 + $0x58] sm:$0xff]   ;;  %v892_v16 = vld [vmem:[%s1196_s1 + $0x60] sm:$0xff]   ;;  %v896_v20 = vld [vmem:[%s1196_s1 + $0x68] sm:$0xff]  }
   0x6   :  { %782 = vmatprep.subr.bf16.mxu1 %v882_v6  ;;  %v889_v13 = vld [vmem:[%s1196_s1 + $0x18] sm:$0xff]   ;;  %v893_v17 = vld [vmem:[%s1196_s1 + $0x20] sm:$0xff]   ;;  %v897_v21 = vld [vmem:[%s1196_s1 + $0x28] sm:$0xff]  }
   0x7   :  { %761 = vmatpush3.bf16.msra.mxu0 %v881_v5  ;;  %v890_v14 = vld [vmem:[%s1196_s1 + $0xd8] sm:$0xff]   ;;  %v894_v18 = vld [vmem:[%s1196_s1 + $0xe0] sm:$0xff]   ;;  %v898_v22 = vld [vmem:[%s1196_s1 + $0xe8] sm:$0xff]  }
   0x8   :  { %762 = vmatprep.subr.bf16.mxu0 %v884_v8  ;;  %v891_v15 = vld [vmem:[%s1196_s1 + $0x98] sm:$0xff]   ;;  %v895_v19 = vld [vmem:[%s1196_s1 + $0xa0] sm:$0xff]   ;;  %v899_v23 = vld [vmem:[%s1196_s1 + $0xa8] sm:$0xff]  }
   0x9   :  { %783 = vmatpush3.bf16.msra.mxu1 %v883_v7  ;;  %v900_v24 = vld [vmem:[%s1196_s1 + $0x70] sm:$0xff]   ;;  %v904_v28 = vld [vmem:[%s1196_s1 + $0x78] sm:$0xff]   ;;  %v23_v31 = vld [vmem:[%s1195_s0 + $0x8] sm:$0xff] }
   0xa   :  { %784 = vmatprep.subr.bf16.mxu1 %v886_v10  ;;  %v901_v25 = vld [vmem:[%s1196_s1 + $0x30] sm:$0xff]   ;;  %v905_v29 = vld [vmem:[%s1196_s1 + $0x38] sm:$0xff]   ;;  %v30_v32 = vpack.c.bf16 %v23_v31, %v23_v31  ;;  %v22_v34 = vld [vmem:[%s1195_s0] sm:$0xff] }
   0xb   :  { %763 = vmatpush3.bf16.msra.mxu0 %v885_v9  ;;  %v902_v26 = vld [vmem:[%s1196_s1 + $0xf0] sm:$0xff]   ;;  %v906_v30 = vld [vmem:[%s1196_s1 + $0xf8] sm:$0xff]   ;;  %v29_v35 = vpack.c.bf16 %v22_v34, %v22_v34  ;;  %v908_v36 = vld [vmem:[%s1196_s1 + $0x140] sm:$0xff]  }
   0xc   :  { %764 = vmatprep.subr.bf16.mxu0 %v888_v12  ;;  %v903_v27 = vld [vmem:[%s1196_s1 + $0xb0] sm:$0xff]   ;;  %v907_v33 = vld [vmem:[%s1196_s1 + $0xb8] sm:$0xff]   ;;  %471 = vmatprep.mubr.bf16.mxu0 %v30_v32  ;;  %v909_v39 = vld [vmem:[%s1196_s1 + $0x100] sm:$0xff]  }
   0xd   :  { %785 = vmatpush3.bf16.msra.mxu1 %v887_v11  ;;  %v25_v37 = vld [vmem:[%s1195_s0 + $0x18] sm:$0xff]  ;;  %v24_v40 = vld [vmem:[%s1195_s0 + $0x10] sm:$0xff]  ;;  %v910_v42 = vld [vmem:[%s1196_s1 + $0x148] sm:$0xff]  }
   0xe   :  { %786 = vmatprep.subr.bf16.mxu1 %v890_v14  ;;  %v32_v38 = vpack.c.bf16 %v25_v37, %v25_v37  ;;  %v31_v41 = vpack.c.bf16 %v24_v40, %v24_v40  ;;  %v911_v43 = vld [vmem:[%s1196_s1 + $0x108] sm:$0xff]   ;;  %v912_v45 = vld [vmem:[%s1196_s1 + $0x150] sm:$0xff]   ;;  %v914_v47 = vld [vmem:[%s1196_s1 + $0x158] sm:$0xff]  }
   0xf   :  { %765 = vmatpush3.bf16.msra.mxu0 %v889_v13  ;;  %v913_v46 = vld [vmem:[%s1196_s1 + $0x110] sm:$0xff]   ;;  %v915_v48 = vld [vmem:[%s1196_s1 + $0x118] sm:$0xff]   ;;  %v916_v49 = vld [vmem:[%s1196_s1 + $0x160] sm:$0xff]  }
  0x10   :  { %766 = vmatprep.subr.bf16.mxu0 %v892_v16  ;;  %511 = vmatprep.mubr.bf16.mxu1 %v32_v38  ;;  %v917_v50 = vld [vmem:[%s1196_s1 + $0x120] sm:$0xff]   ;;  %v918_v51 = vld [vmem:[%s1196_s1 + $0x168] sm:$0xff]   ;;  %v28_v55 = vld [vmem:[%s1195_s0 + $0x30] sm:$0xff] }
  0x11   :  { %787 = vmatpush3.bf16.msra.mxu1 %v891_v15  ;;  %v924_v52 = vld [vmem:[%s1196_s1 + $0x180] sm:$0xff]   ;;  %v27_v53 = vld [vmem:[%s1195_s0 + $0x28] sm:$0xff] }
  0x12   :  { %788 = vmatprep.subr.bf16.mxu1 %v894_v18  ;;  %v34_v54 = vpack.c.bf16 %v27_v53, %v27_v53 }
  0x13   :  { %767 = vmatpush3.bf16.msra.mxu0 %v893_v17 }
  0x14   :  { %768 = vmatprep.subr.bf16.mxu0 %v896_v20 }
  0x15   :  { %789 = vmatpush3.bf16.msra.mxu1 %v895_v19 }
  0x16   :  { %790 = vmatprep.subr.bf16.mxu1 %v898_v22 }
  0x17   :  { %769 = vmatpush3.bf16.msra.mxu0 %v897_v21 }
  0x18   :  { %770 = vmatprep.subr.bf16.mxu0 %v900_v24 }
  0x19   :  { %791 = vmatpush3.bf16.msra.mxu1 %v899_v23 }
  0x1a   :  { %792 = vmatprep.subr.bf16.mxu1 %v902_v26 }
  0x1b   :  { %771 = vmatpush3.bf16.msra.mxu0 %v901_v25 }
  0x1c   :  { %772 = vmatprep.subr.bf16.mxu0 %v904_v28 }
  0x1d   :  { %793 = vmatpush3.bf16.msra.mxu1 %v903_v27 }
  0x1e   :  { %794 = vmatprep.subr.bf16.mxu1 %v906_v30 }
  0x1f   :  { %773 = vmatpush3.bf16.msra.mxu0 %v905_v29 }
  0x20   :  { %802 = vmatprep.subr.bf16.mxu0 %v908_v36 }
  0x21   :  { %795 = vmatpush3.bf16.msra.mxu1 %v907_v33 }
  0x22   :  { %472 = vmatmul.mubr.bf16.vlgmr.msra.gmra.mrb[0].mxu0 %v29_v35  ;;  %835 = vmatprep.subr.bf16.mxu1 %v949_v44 }
  0x23   :  { %803 = vmatpush3.bf16.msra.mxu0 %v909_v39 }
  0x24   :  { %512 = vmatmul.mubr.bf16.vlgmr.msra.gmra.mrb[0].mxu1 %v31_v41  ;;  %804 = vmatprep.subr.bf16.mxu0 %v910_v42 }
  0x25   :  { %837 = vmatprep.mubr.msk.bf16.mxu1 %vm950_vm0, %v949_v44 }
  0x27   :  { %805 = vmatpush3.bf16.msra.mxu0 %v911_v43 }
  0x28   :  { %806 = vmatprep.subr.bf16.mxu0 %v912_v45 }
  0x2b   :  { %807 = vmatpush3.bf16.msra.mxu0 %v913_v46 }
  0x2c   :  { %808 = vmatprep.subr.bf16.mxu0 %v914_v47 }
  0x2f   :  { %809 = vmatpush3.bf16.msra.mxu0 %v915_v48 }
  0x30   :  { %810 = vmatprep.subr.bf16.mxu0 %v916_v49 }
  0x31   :  { %10 = vsyncpa [#allocation3], 0  ;;  %v919_v56 = vld [vmem:[%s1196_s1 + $0x128] sm:$0xff]   ;;  %836 = vmatpush3.bf16.msra.mxu1 %v924_v52  ;;  %v35_v57 = vpack.c.bf16 %v28_v55, %v28_v55  ;;  %vm435_vm1 = vcmask 130048   ;;  %v920_v58 = vld [vmem:[%s1196_s1 + $0x170] sm:$0xff]   ;;  %551 = vmatprep.mubr.bf16.mxu0 %v34_v54  ;;  %v951_v3 = vmov 0.0|0.0  }
  0x32   :  { %v921_v59 = vld [vmem:[%s1196_s1 + $0x130] sm:$0xff]   ;;  %v922_v60 = vld [vmem:[%s1196_s1 + $0x178] sm:$0xff]   ;;  %v26_v62 = vld [vmem:[%s1195_s0 + $0x20] sm:$0xff]  ;;  %860 = vmatprep.subr.bf16.mxu1 %v951_v3  ;;  %vm615_vm2 = vcmask 523264   ;;  %s952_s21 = smov [#allocation2]   ;;  %vm689_vm3 = vcmask 80896  }
  0x33   :  { %811 = vmatpush3.bf16.msra.mxu0 %v917_v50  ;;  %v923_v61 = vld [vmem:[%s1196_s1 + $0x138] sm:$0xff]   ;;  %v33_v63 = vpack.c.bf16 %v26_v62, %v26_v62  ;;  %v600_v0 = vld [vmem:[%s1198_s3] sm:$0xff]  ;;  %v601_v1 = vld [vmem:[%s1198_s3 + $0x8] sm:$0xff]  ;;  %s697_s22 = sshll.u32 %s952_s21, 4  ;;  %s698_s22 = int_to_ptr.vmem [resolvable:$true] %s697_s22 }
  0x34   :  { %812 = vmatprep.subr.bf16.mxu0 %v918_v51  ;;  %838 = vmatmul.mubr.msk.bf16.vlgmr.msra.gmra.mrb[4].mxu1 %vm435_vm1, %v35_v57  ;;  %v602_v2 = vld [vmem:[%s1198_s3 + $0x10] sm:$0xff]  ;;  %v861_v4 = vpack.c.bf16 %v601_v1, %v600_v0  ;;  %v603_v5 = vld [vmem:[%s1198_s3 + $0x18] sm:$0xff]  ;;  %v604_v7 = vld [vmem:[%s1198_s3 + $0x20] sm:$0xff]  ;;  %s925_s23 = scalar_lea.vmem %s698_s22, 128  ;;  %p930_p1 = scmp.lt.s32.totalorder %s698_s22, %s698_s22 }
  0x35   :  { %857 = vmatprep.mubr.msk.f32.mxu1 %vm950_vm0, %v949_v44  ;;  %v864_v6 = vpack.c.bf16 %v603_v5, %v602_v2  ;;  %v605_v8 = vld [vmem:[%s1198_s3 + $0x28] sm:$0xff]  ;;  %v606_v10 = vld [vmem:[%s1198_s3 + $0x30] sm:$0xff]  ;;  %v607_v11 = vld [vmem:[%s1198_s3 + $0x38] sm:$0xff]  ;;  %p926_p0 = scmp.ne.s32.totalorder %s698_s22, %s925_s23  ;;  %p931_p2 = scmp.lt.s32.totalorder %s925_s23, %s925_s23 }
  0x36   :  { %862 = vmatpush3.bf16.msra.mxu1 %v861_v4  ;;  %v867_v9 = vpack.c.bf16 %v605_v8, %v604_v7  ;;  %v870_v12 = vpack.c.bf16 %v607_v11, %v606_v10  ;;  %v705_v14 = vld [vmem:[%s1197_s2] ss:$0 sm:$0xff] }
  0x37   :  { %813 = vmatpush3.bf16.msra.mxu0 %v919_v56  ;;  %863 = vmatprep.subr.bf16.mxu1 %v951_v3  ;;  %v756_v38 = vld [vmem:[%s1199_s4] ss:$0 sm:$0xff]  ;;  %p932_p3 = por %p931_p2, %p930_p1 }
  0x38   :  { %814 = vmatprep.subr.bf16.mxu0 %v920_v58 }
  0x39   :  { %p933_p4 = pnand %p932_p3, %p926_p0 }
  0x3a   :  { %865 = vmatpush3.bf16.msra.mxu1 %v864_v6 }
  0x3b   :  { %815 = vmatpush3.bf16.msra.mxu0 %v921_v59  ;;  %866 = vmatprep.subr.bf16.mxu1 %v951_v3 }
  0x3c   :  { %816 = vmatprep.subr.bf16.mxu0 %v922_v60 }
  0x3e   :  { %868 = vmatpush3.bf16.msra.mxu1 %v867_v9 }
  0x3f   :  { %817 = vmatpush3.bf16.msra.mxu0 %v923_v61  ;;  %869 = vmatprep.subr.bf16.mxu1 %v951_v3 }
  0x42   :  { %552 = vmatmul.mubr.bf16.vlgmr.msra.gmra.mrb[4].mxu0 %v33_v63  ;;  %871 = vmatpush3.bf16.msra.mxu1 %v870_v12 }
  0xf5   :  { %v774_v13 = vpop.f32.mrb[0].mxu0 }
  0xf6   :  { %v775_v15 = vpop.f32.mrb[1].mxu0 }
  0xf7   :  { %v776_v16 = vadd.f32 %v775_v15, %v774_v13  ;;  %v777_v17 = vpop.f32.mrb[2].mxu0  ;;  %v796_v18 = vpop.f32.mrb[0].mxu1 }
  0xf8   :  { %v778_v19 = vpop.f32.mrb[3].mxu0  ;;  %v797_v21 = vpop.f32.mrb[1].mxu1 }
  0xf9   :  { %v474_v20 = vadd.f32 %v776_v16, %v705_v14  ;;  %v798_v22 = vadd.f32 %v797_v21, %v796_v18  ;;  %v799_v23 = vpop.f32.mrb[2].mxu1 }
  0xfa   :  { %v800_v24 = vpop.f32.mrb[3].mxu1 }
  0xfb   :  { %v514_v25 = vadd.f32 %v798_v22, %v474_v20 }
 0x107   :  { %v593_v26 = vpop.f32.mrb[4].mxu1 }
 0x108   :  { %v839_v27 = vpop.f32.mrb[5].mxu1 }
 0x109   :  { %v596_v28 = vpop.f32.mrb[6].mxu1 }
 0x10a   :  { %v840_v29 = vpop.f32.mrb[7].mxu1 }
 0x115   :  { %v818_v30 = vpop.f32.mrb[4].mxu0 }
 0x116   :  { %v819_v31 = vpop.f32.mrb[5].mxu0 }
 0x117   :  { %v820_v32 = vadd.f32 %v819_v31, %v818_v30  ;;  %v821_v33 = vpop.f32.mrb[6].mxu0 }
 0x118   :  { %v822_v34 = vpop.f32.mrb[7].mxu0 }
 0x119   :  { %v554_v35 = vadd.f32 %v820_v32, %v514_v25 }
 0x11b   :  { %v594_v36 = vadd.f32 %v593_v26, %v554_v35 }
 0x11d   :  { %v599_v37 = vmax.f32 %v594_v36, 0.0 }
 0x11f   :  { %858 = vmatmul.mubr.msk.f32.vlgmr.msra.gmra.mrb[8].mxu1 %vm615_vm2, %v599_v37 }
 0x1f2   :  { %v685_v39 = vpop.f32.mrb[8].mxu1 }
 0x1f3   :  { %v686_v40 = vadd.f32 %v756_v38, %v685_v39  ;;  %v859_v41 = vpop.f32.mrb[9].mxu1 }
 0x1f5   :  { %690 = vst.msk [vmem:[#allocation2] sm:$0xff] %vm689_vm3, %v686_v40 }
 0x1f6   :  { %936 = shalt.err (!%p933_p4)
}
 0x1f7   :  { %s937_s26 = scalar_lea.hbm %s1200_s5, 128 }
 0x1f8   :  { %p938_p5 = scmp.ne.s32.totalorder %s1200_s5, %s937_s26  ;;  %p941_p6 = scmp.lt.u32.totalorder %s937_s26, %s1200_s5 }
 0x1fa   :  { %p943_p7 = pnand %p941_p6, %p938_p5 }
 0x1fc   :  { %946 = shalt.err (!%p943_p7)
}
 0x1fd   :  { %700 = dma.vmem_to_hbm [thread:$0]  %s698_s22, 128, %s1200_s5, [#allocation3]  }
 0x1fe   :  { %947 = dma.done.wait [#allocation3], 128  }
 0x1ff   :  { %948 = vsyncadd [#allocation3], 4294967168 }
 0x200   :  { %704 = vsyncpa [#allocation3], 1 }

</bundles_post_ra>
